<compile_context>
chip_gen: v7x
topology: tpu7x:2x2x1
jax: 0.10.0
libtpu: 0.0.40
codegen_flags: <defaults>
</compile_context>

<pallas_src>
import functools

import jax
import jax.numpy as jnp
from jax.experimental import pallas as pl
from jax.experimental.pallas import tpu as pltpu

_MIB = 1024 * 1024
_LANE_CANDIDATES = (2048, 1024, 512, 256, 128)


def _h_swish_kernel(x_ref, o_ref):
    x = x_ref[...]
    # Compute in >= f32 (PyTorch uses float opmath for half dtypes); free here
    # because the kernel is HBM-bound — VPU/EUP slots have huge slack.
    cd = jnp.promote_types(x.dtype, jnp.float32)
    xf = x.astype(cd)
    hs = jnp.clip(xf + 3.0, 0.0, 6.0) / 6.0   # h_sigmoid(x) = ReLU6(x+3)/6
    o_ref[...] = (xf * hs).astype(o_ref.dtype)


def _h_swish_jnp(x):
    """Plain-jnp fallback for tiny / ragged tails (< 128 elements)."""
    cd = jnp.promote_types(x.dtype, jnp.float32)
    xf = x.astype(cd)
    return (xf * jnp.clip(xf + 3.0, 0.0, 6.0) / 6.0).astype(x.dtype)


def _round_up(a, b):
    return ((a + b - 1) // b) * b


def _chip_default_block_bytes():
    """Per-generation block-size default (trace-time Python, not traced)."""
    try:
        kind = jax.devices()[0].device_kind.lower()
    except Exception:
        kind = ""
    if "v7" in kind:
        return 8 * _MIB   # 3.2 TB/s HBM: halve step count; 4x8 MiB << 64 MiB VMEM
    if "v6" in kind:
        return 4 * _MIB   # 1-4 MiB blocks already reach ~85-86% of HBM roofline
    return 2 * _MIB       # v5e (16 MiB scoped-VMEM default) and unknown chips


def _h_swish_impl(x, block_bytes, vmem_limit_bytes, donate):
    orig_shape = x.shape
    orig_dtype = x.dtype
    n = x.size
    if n == 0:
        return x

    x_flat = jnp.ravel(x)          # metadata-only for contiguous inputs
    n_main = (n // 128) * 128      # lane-aligned prefix handled by the kernel
    if n_main == 0:
        # Fewer than 128 elements: a kernel launch is pure overhead.
        return _h_swish_jnp(x_flat).reshape(orig_shape)

    itemsize = jnp.dtype(orig_dtype).itemsize
    # Native sublane packing: 8 rows for 4-byte, 16 for bf16/f16, 32 for int8/fp8.
    sub = max(8, 32 // max(1, itemsize))

    x_main = x_flat if n_main == n else jax.lax.slice(x_flat, (0,), (n_main,))

    # Widest lane width (multiple of 128) dividing the aligned length; a
    # lane-dense output slab keeps stores unmasked (vst, not vst.msk).
    lane = 128
    for cand in _LANE_CANDIDATES:
        if n_main % cand == 0:
            lane = cand
            break
    rows = n_main // lane
    x2d = x_main.reshape(rows, lane)

    # Row tile sized to ~block_bytes per grid step, rounded to the native
    # sublane packing for this dtype.
    tile_rows = max(sub, (block_bytes // (lane * itemsize)) // sub * sub)
    if tile_rows >= rows:
        if rows >= 2 * sub:
            # Split into 2 steps so both v7x TensorCores get work.
            tile_rows = _round_up(pl.cdiv(rows, 2), sub)
        else:
            tile_rows = rows          # single full-extent block
    else:
        g = pl.cdiv(rows, tile_rows)
        if g % 2:
            # Even grid keeps both v7x TCs balanced (neutral on v5e/v6e).
            tile_rows = max(sub, _round_up(pl.cdiv(rows, g + 1), sub))
    grid = pl.cdiv(rows, tile_rows)

    out2d = pl.pallas_call(
        _h_swish_kernel,
        out_shape=jax.ShapeDtypeStruct((rows, lane), orig_dtype),
        grid_spec=pltpu.PrefetchScalarGridSpec(
            num_scalar_prefetch=0,
            grid=(grid,),
            in_specs=[pl.BlockSpec((tile_rows, lane), lambda i: (i, 0))],
            out_specs=pl.BlockSpec((tile_rows, lane), lambda i: (i, 0)),
        ),
        compiler_params=pltpu.CompilerParams(
            dimension_semantics=("parallel",),
            vmem_limit_bytes=vmem_limit_bytes,
        ),
        input_output_aliases=({0: 0} if donate else {}),
    )(x2d)

    out_flat = out2d.reshape(-1)
    if n_main != n:
        # Rare ragged tail (< 128 elements): plain jnp, stitched back on.
        tail = jax.lax.slice(x_flat, (n_main,), (n,))
        out_flat = jnp.concatenate([out_flat, _h_swish_jnp(tail)])
    return out_flat.reshape(orig_shape)


@functools.partial(jax.jit, static_argnames=("target_block_bytes", "donate"))
def h_swish(x, *, target_block_bytes=None, donate=False):
    """Elementwise h_swish: x * ReLU6(x+3)/6 (forward of the PyTorch module).

    target_block_bytes: per-grid-step block size; default is picked per chip
        generation (v5e 2 MiB / v6e 4 MiB / v7x 8 MiB).
    donate: alias input HBM buffer to the output (in-place for donating callers).
        Leave False otherwise — a non-donated input would force a defensive copy.
    """
    block_bytes = target_block_bytes or _chip_default_block_bytes()
    # 2x input + 2x output double buffers + headroom for internal scratch,
    # capped so even v7x's 64 MiB physical VMEM keeps slack.
    vmem_limit = min(4 * block_bytes + 8 * _MIB, 48 * _MIB)
    return _h_swish_impl(x, block_bytes, vmem_limit, donate)


def h_swish_ref(x):
    xf = x.astype(jnp.promote_types(x.dtype, jnp.float32))
    return (xf * jnp.clip(xf + 3.0, 0.0, 6.0) / 6.0).astype(x.dtype)


if __name__ == "__main__":
    key = jax.random.PRNGKey(0)

    # NCHW input consistent with the module's usage inside SPPF_improve.
    x = jax.random.normal(key, (2, 4, 16, 16), dtype=jnp.float32) * 4.0
    out = jax.block_until_ready(h_swish(x))
    assert out.shape == x.shape and out.dtype == x.dtype
    assert jnp.allclose(out, h_swish_ref(x), atol=1e-6, rtol=1e-6)

    # bf16: f32 opmath inside the kernel, cast on store; dtype-aware tiling.
    x_bf = x.astype(jnp.bfloat16)
    out_bf = jax.block_until_ready(h_swish(x_bf))
    assert out_bf.dtype == jnp.bfloat16
    assert jnp.allclose(out_bf.astype(jnp.float32),
                        h_swish_ref(x_bf).astype(jnp.float32),
                        atol=2e-2, rtol=2e-2)

    # numel not a multiple of 128 -> aligned-prefix kernel + tiny jnp tail.
    x_odd = jax.random.normal(key, (3, 5, 7, 11), dtype=jnp.float32) * 4.0
    out_odd = jax.block_until_ready(h_swish(x_odd))
    assert jnp.allclose(out_odd, h_swish_ref(x_odd), atol=1e-6, rtol=1e-6)

    # Small block target forces a multi-step (even) grid with a masked last
    # row-block — the path large real activations rely on.
    x_part = jax.random.normal(key, (2, 4, 40, 36), dtype=jnp.float32) * 4.0
    out_part = jax.block_until_ready(h_swish(x_part, target_block_bytes=64 * 1024))
    assert jnp.allclose(out_part, h_swish_ref(x_part), atol=1e-6, rtol=1e-6)

    print("KERNEL_OK")
</pallas_src>

<mosaic_0001>
module attributes {stable_mosaic.version = 11 : i64} {
  func.func @_h_swish_kernel(%arg0: i32, %arg1: memref<1x2048xf32, #tpu.memory_space<vmem>>, %arg2: memref<1x2048xf32, #tpu.memory_space<vmem>>) attributes {dimension_semantics = [#tpu.dimension_semantics<parallel>], iteration_bounds = array<i64: 1>, scalar_prefetch = 0 : i64, scratch_operands = 0 : i64, tpu.core_type = #tpu.core_type<tc>, window_params = [{transform_indices = @transform_0, window_bounds = array<i64: 1, 2048>}, {transform_indices = @transform_1, window_bounds = array<i64: 1, 2048>}]} {
    %c0 = arith.constant 0 : index
    %c0_0 = arith.constant 0 : index
    %0 = vector.load %arg1[%c0, %c0_0] : memref<1x2048xf32, #tpu.memory_space<vmem>>, vector<1x2048xf32>
    %cst = arith.constant 3.000000e+00 : f32
    %1 = vector.broadcast %cst : f32 to vector<1x2048xf32>
    %2 = arith.addf %0, %1 : vector<1x2048xf32>
    %cst_1 = arith.constant 0.000000e+00 : f32
    %cst_2 = arith.constant 6.000000e+00 : f32
    %3 = vector.broadcast %cst_1 : f32 to vector<1x2048xf32>
    %4 = arith.maximumf %3, %2 : vector<1x2048xf32>
    %5 = vector.broadcast %cst_2 : f32 to vector<1x2048xf32>
    %6 = arith.minimumf %5, %4 : vector<1x2048xf32>
    %cst_3 = arith.constant 6.000000e+00 : f32
    %7 = vector.broadcast %cst_3 : f32 to vector<1x2048xf32>
    %8 = arith.divf %6, %7 : vector<1x2048xf32>
    %9 = arith.mulf %0, %8 : vector<1x2048xf32>
    %c0_4 = arith.constant 0 : index
    %c0_5 = arith.constant 0 : index
    %10 = vector.load %arg2[%c0_4, %c0_5] : memref<1x2048xf32, #tpu.memory_space<vmem>>, vector<1x2048xf32>
    tpu.vector_store %arg2[%c0_4, %c0_5], %9 {strides = array<i32>} : memref<1x2048xf32, #tpu.memory_space<vmem>>, vector<1x2048xf32>,
    return
  }
  func.func @transform_0(%arg0: i32) -> (i32, i32) {
    %c0_i32 = arith.constant 0 : i32
    %c0_i32_0 = arith.constant 0 : i32
    return %arg0, %c0_i32 : i32, i32
  }
  func.func @transform_1(%arg0: i32) -> (i32, i32) {
    %c0_i32 = arith.constant 0 : i32
    %c0_i32_0 = arith.constant 0 : i32
    return %arg0, %c0_i32 : i32, i32
  }
}

</mosaic_0001>

<bundles_post_ra>
// kernel: h_swish.1
= control target key start
LH: loop header
LB: loop body
LE: loop exit
PB: predicated region body
PF: predicated region fallthrough
CT: control target
= control target key end

     0   :  { %s49_s0 = inlined_call_operand.vmem [shape: f32[1,2048], index: 0, kind: input, shape index: {}]   ;;  %s50_s1 = inlined_call_operand.vmem [shape: f32[1,2048], index: 1, kind: output, shape index: {}]  }
   0x1   :  { %v8_v0 = vld [vmem:[%s49_s0] sm:$0xff]  ;;  %v9_v1 = vld [vmem:[%s49_s0 + $0x8] sm:$0xff] }
   0x2   :  { %v10_v2 = vadd.f32 3.0, %v8_v0  ;;  %v11_v3 = vadd.f32 3.0, %v9_v1 }
   0x4   :  { %v12_v4 = vmax.f32 %v10_v2, 0.0  ;;  %v13_v5 = vmax.f32 %v11_v3, 0.0 }
   0x6   :  { %v14_v6 = vmin.f32 %v12_v4, 6.0  ;;  %v15_v7 = vmin.f32 %v13_v5, 6.0 }
   0x8   :  { %v17_v8 = vmul.f32 0.16666667, %v14_v6  ;;  %v18_v9 = vmul.f32 0.16666667, %v15_v7 }
   0xa   :  { %v19_v10 = vmul.f32 %v17_v8, %v8_v0  ;;  %v20_v11 = vmul.f32 %v18_v9, %v9_v1 }
   0xc   :  { %21 = vst [vmem:[%s50_s1] sm:$0xff] %v19_v10  ;;  %22 = vst [vmem:[%s50_s1 + $0x8] sm:$0xff] %v20_v11 }

</bundles_post_ra>
